<compile_context>
chip_gen: v7x
topology: tpu7x:2x2x1
jax: 0.10.0
libtpu: 0.0.40
codegen_flags: <defaults>
</compile_context>

<pallas_src>
import math

import jax
import jax.numpy as jnp
from jax.experimental import pallas as pl
from jax.experimental.pallas import tpu as pltpu

LANE = 128


def _round_up(x, m):
    return ((x + m - 1) // m) * m


# ----------------------------------------------------------------------------
# Pallas kernel: fused 4-layer MLP (both sub-nets packed along the lane axis)
# ----------------------------------------------------------------------------
def mlp_alt_kernel(x_ref, w1_ref, b1_ref, w2_ref, b2_ref,
                   w3_ref, b3_ref, w4_ref, b4_ref, c_ref, o_ref):
    mm_dtype = x_ref.dtype
    x = x_ref[...]                       # (TB, C_in)   bf16 / f32
    c = c_ref[...]                       # (3, P_h)     f32, softplus(beta) per column

    def swish(h, l):
        # PyTorch Swish without the /1.1 (folded into the following layer's weights).
        return h * jax.nn.sigmoid(h * c[l:l + 1, :])

    h = jnp.dot(x, w1_ref[...], preferred_element_type=jnp.float32) + b1_ref[...]
    h = swish(h, 0).astype(mm_dtype)
    h = jnp.dot(h, w2_ref[...], preferred_element_type=jnp.float32) + b2_ref[...]
    h = swish(h, 1).astype(mm_dtype)
    h = jnp.dot(h, w3_ref[...], preferred_element_type=jnp.float32) + b3_ref[...]
    h = swish(h, 2).astype(mm_dtype)
    out = jnp.dot(h, w4_ref[...], preferred_element_type=jnp.float32) + b4_ref[...]
    o_ref[...] = out.astype(o_ref.dtype)


# ----------------------------------------------------------------------------
# One-time parameter preparation (hoisted out of the per-call path)
# ----------------------------------------------------------------------------
def prepare_params(params, matmul_dtype=jnp.bfloat16):
    na, nb = params['net_a'], params['net_b']
    C = nb['w1'].shape[0]        # code_size
    Ch = na['w1'].shape[0]       # code_size // 2
    H = na['w1'].shape[1]        # hidden_size
    inv11 = jnp.float32(1.0 / 1.1)

    def blkdiag(wa, wb):
        top = jnp.concatenate(
            [wa, jnp.zeros((wa.shape[0], wb.shape[1]), jnp.float32)], axis=1)
        bot = jnp.concatenate(
            [jnp.zeros((wb.shape[0], wa.shape[1]), jnp.float32), wb], axis=1)
        return jnp.concatenate([top, bot], axis=0)

    # Layer 1: net_a only sees the first Ch input columns (zero rows below).
    w1 = jnp.zeros((C, 2 * H), jnp.float32)
    w1 = w1.at[:Ch, :H].set(na['w1']).at[:, H:].set(nb['w1'])
    b1 = jnp.concatenate([na['b1'], nb['b1']])

    # Layers 2-4: block-diagonal; fold 1/1.1 from the preceding Swish into W.
    w2 = blkdiag(na['w2'], nb['w2']) * inv11
    b2 = jnp.concatenate([na['b2'], nb['b2']])
    w3 = blkdiag(na['w3'], nb['w3']) * inv11
    b3 = jnp.concatenate([na['b3'], nb['b3']])
    w4 = blkdiag(na['w4'], nb['w4']) * inv11          # (2H, C)
    b4 = jnp.concatenate([na['b4'], nb['b4']])        # (C,)

    # Per-column softplus(beta): first H columns = net_a's beta, next H = net_b's.
    def beta_row(ba, bb):
        return jnp.concatenate(
            [jnp.full((H,), jax.nn.softplus(ba), jnp.float32),
             jnp.full((H,), jax.nn.softplus(bb), jnp.float32)])

    c = jnp.stack([beta_row(na['beta1'], nb['beta1']),
                   beta_row(na['beta2'], nb['beta2']),
                   beta_row(na['beta3'], nb['beta3'])])          # (3, 2H)

    # Pad feature dims to lane width (zero pads -> padded lanes stay exactly 0).
    Ph = _round_up(2 * H, LANE)
    Pout = _round_up(C, LANE)

    def padw(w, rows, cols):
        return jnp.pad(w, ((0, rows - w.shape[0]), (0, cols - w.shape[1])))

    def padb(b, cols):
        return jnp.pad(b, (0, cols - b.shape[0])).reshape(1, cols)

    prep = {
        'w1': padw(w1, C, Ph).astype(matmul_dtype),
        'b1': padb(b1, Ph),
        'w2': padw(w2, Ph, Ph).astype(matmul_dtype),
        'b2': padb(b2, Ph),
        'w3': padw(w3, Ph, Ph).astype(matmul_dtype),
        'b3': padb(b3, Ph),
        'w4': padw(w4, Ph, Pout).astype(matmul_dtype),
        'b4': padb(b4, Pout),
        'c': jnp.pad(c, ((0, 0), (0, Ph - 2 * H)), constant_values=1.0),
        'code_size': C,
    }
    return prep


# ----------------------------------------------------------------------------
# Forward wrapper: grid over batch rows, weights VMEM-resident
# ----------------------------------------------------------------------------
def mlp_alt_forward(x, prep, block_rows=128):
    C = prep['code_size']
    mm_dtype = prep['w1'].dtype
    Ph = prep['w2'].shape[0]
    Pout = prep['b4'].shape[1]

    lead = x.shape[:-1]
    rows = int(math.prod(lead)) if lead else 1
    Cin = x.shape[-1]
    x2 = x.reshape(rows, Cin).astype(mm_dtype)

    TB = block_rows
    num_blocks = pl.cdiv(rows, TB)
    rows_p = num_blocks * TB
    if rows_p != rows:
        x2 = jnp.pad(x2, ((0, rows_p - rows), (0, 0)))

    weights = (prep['w1'], prep['b1'], prep['w2'], prep['b2'],
               prep['w3'], prep['b3'], prep['w4'], prep['b4'], prep['c'])

    def resident(arr):  # full array, constant block index -> DMA'd once, stays in VMEM
        return pl.BlockSpec(arr.shape, lambda i: (0, 0))

    flops = 2 * rows_p * (Cin * Ph + Ph * Ph + Ph * Ph + Ph * Pout)
    transcendentals = 3 * rows_p * Ph
    bytes_accessed = (x2.size * x2.dtype.itemsize + rows_p * Pout * 4 +
                      sum(int(a.size) * a.dtype.itemsize for a in weights))

    out = pl.pallas_call(
        mlp_alt_kernel,
        out_shape=jax.ShapeDtypeStruct((rows_p, Pout), jnp.float32),
        grid=(num_blocks,),
        in_specs=[pl.BlockSpec((TB, Cin), lambda i: (i, 0))]
                 + [resident(a) for a in weights],
        out_specs=pl.BlockSpec((TB, Pout), lambda i: (i, 0)),
        compiler_params=pltpu.CompilerParams(
            dimension_semantics=("parallel",),
            vmem_limit_bytes=32 * 1024 * 1024),
        cost_estimate=pl.CostEstimate(flops=flops,
                                      transcendentals=transcendentals,
                                      bytes_accessed=bytes_accessed),
    )(x2, *weights)

    out = out[:rows, :C]
    return out.reshape(*lead, C)


# ----------------------------------------------------------------------------
# Pure-JAX reference (mirrors the PyTorch module exactly, f32)
# ----------------------------------------------------------------------------
def mlp_alt_reference(x, params):
    def swish(h, beta):
        return (h * jax.nn.sigmoid(h * jax.nn.softplus(beta))) / 1.1

    def run(net, h):
        h = swish(h @ net['w1'] + net['b1'], net['beta1'])
        h = swish(h @ net['w2'] + net['b2'], net['beta2'])
        h = swish(h @ net['w3'] + net['b3'], net['beta3'])
        return h @ net['w4'] + net['b4']

    dim = x.shape[-1]
    return jnp.concatenate([run(params['net_a'], x[..., :dim // 2]),
                            run(params['net_b'], x)], axis=-1)


# ----------------------------------------------------------------------------
# Deterministic parameter initialization (torch-style uniform init)
# ----------------------------------------------------------------------------
def init_params(key, code_size, hidden_size):
    def linear(k, fan_in, fan_out):
        kw, kb = jax.random.split(k)
        bound = 1.0 / math.sqrt(fan_in)
        w = jax.random.uniform(kw, (fan_in, fan_out), jnp.float32, -bound, bound)
        b = jax.random.uniform(kb, (fan_out,), jnp.float32, -bound, bound)
        return w, b

    def net(k, in_size, hidden, out_size):
        ks = jax.random.split(k, 5)
        w1, b1 = linear(ks[0], in_size, hidden)
        w2, b2 = linear(ks[1], hidden, hidden)
        w3, b3 = linear(ks[2], hidden, hidden)
        w4, b4 = linear(ks[3], hidden, out_size)
        # Torch inits all Swish betas to 0.5; perturb slightly so the per-column
        # beta plumbing is actually exercised by the correctness check.
        betas = jax.random.uniform(ks[4], (3,), jnp.float32, 0.3, 0.7)
        return dict(w1=w1, b1=b1, w2=w2, b2=b2, w3=w3, b3=b3, w4=w4, b4=b4,
                    beta1=betas[0], beta2=betas[1], beta3=betas[2])

    ka, kb = jax.random.split(key)
    Ch = code_size // 2
    return {'net_a': net(ka, Ch, hidden_size, Ch),
            'net_b': net(kb, code_size, hidden_size, Ch)}


if __name__ == "__main__":
    B, code_size, hidden_size = 512, 16, 32   # small shapes; grid of 4 batch tiles

    key = jax.random.PRNGKey(0)
    kx, kp = jax.random.split(key)
    x = jax.random.normal(kx, (B, code_size), jnp.float32)
    params = init_params(kp, code_size, hidden_size)

    ref = mlp_alt_reference(x, params)

    # f32 matmul-input path: tight check of the fusion / folding / padding logic.
    out_f32 = jax.block_until_ready(mlp_alt_forward(x, prepare_params(params, jnp.float32)))
    assert out_f32.shape == (B, code_size)
    assert jnp.allclose(out_f32, ref, atol=1e-2, rtol=1e-2)

    # bf16 matmul-input path (MXU-friendly production configuration).
    out_bf16 = jax.block_until_ready(mlp_alt_forward(x, prepare_params(params, jnp.bfloat16)))
    assert out_bf16.shape == (B, code_size)
    assert jnp.allclose(out_bf16, ref, atol=5e-2, rtol=5e-2)

    print("KERNEL_OK")
</pallas_src>

<mosaic_0001>
module attributes {stable_mosaic.version = 11 : i64} {
  func.func @mlp_alt_kernel(%arg0: i32, %arg1: memref<128x16xf32, #tpu.memory_space<vmem>>, %arg2: memref<16x128xf32, #tpu.memory_space<vmem>>, %arg3: memref<1x128xf32, #tpu.memory_space<vmem>>, %arg4: memref<128x128xf32, #tpu.memory_space<vmem>>, %arg5: memref<1x128xf32, #tpu.memory_space<vmem>>, %arg6: memref<128x128xf32, #tpu.memory_space<vmem>>, %arg7: memref<1x128xf32, #tpu.memory_space<vmem>>, %arg8: memref<128x128xf32, #tpu.memory_space<vmem>>, %arg9: memref<1x128xf32, #tpu.memory_space<vmem>>, %arg10: memref<3x128xf32, #tpu.memory_space<vmem>>, %arg11: memref<128x128xf32, #tpu.memory_space<vmem>>) attributes {dimension_semantics = [#tpu.dimension_semantics<parallel>], iteration_bounds = array<i64: 4>, scalar_prefetch = 0 : i64, scratch_operands = 0 : i64, tpu.core_type = #tpu.core_type<tc>, window_params = [{transform_indices = @transform_0, window_bounds = array<i64: 128, 16>}, {pipeline_mode = #tpu.pipeline_mode<synchronous>, transform_indices = @transform_1, window_bounds = array<i64: 16, 128>}, {pipeline_mode = #tpu.pipeline_mode<synchronous>, transform_indices = @transform_2, window_bounds = array<i64: 1, 128>}, {pipeline_mode = #tpu.pipeline_mode<synchronous>, transform_indices = @transform_3, window_bounds = array<i64: 128, 128>}, {pipeline_mode = #tpu.pipeline_mode<synchronous>, transform_indices = @transform_4, window_bounds = array<i64: 1, 128>}, {pipeline_mode = #tpu.pipeline_mode<synchronous>, transform_indices = @transform_5, window_bounds = array<i64: 128, 128>}, {pipeline_mode = #tpu.pipeline_mode<synchronous>, transform_indices = @transform_6, window_bounds = array<i64: 1, 128>}, {pipeline_mode = #tpu.pipeline_mode<synchronous>, transform_indices = @transform_7, window_bounds = array<i64: 128, 128>}, {pipeline_mode = #tpu.pipeline_mode<synchronous>, transform_indices = @transform_8, window_bounds = array<i64: 1, 128>}, {pipeline_mode = #tpu.pipeline_mode<synchronous>, transform_indices = @transform_9, window_bounds = array<i64: 3, 128>}, {transform_indices = @transform_10, window_bounds = array<i64: 128, 128>}]} {
    %c0 = arith.constant 0 : index
    %c0_0 = arith.constant 0 : index
    %0 = vector.load %arg1[%c0, %c0_0] : memref<128x16xf32, #tpu.memory_space<vmem>>, vector<128x16xf32>
    %c0_1 = arith.constant 0 : index
    %c0_2 = arith.constant 0 : index
    %1 = vector.load %arg10[%c0_1, %c0_2] : memref<3x128xf32, #tpu.memory_space<vmem>>, vector<3x128xf32>
    %c0_3 = arith.constant 0 : index
    %c0_4 = arith.constant 0 : index
    %2 = vector.load %arg2[%c0_3, %c0_4] : memref<16x128xf32, #tpu.memory_space<vmem>>, vector<16x128xf32>
    %cst = arith.constant dense<0.000000e+00> : vector<128x128xf32>
    %3 = tpu.matmul %0, %2, %cst {dimension_numbers = #tpu.dot_dimension_numbers<[1], [0], [0], [1], [0, 0, 1, 1], [], []>} : vector<128x16xf32>, vector<16x128xf32>, vector<128x128xf32> -> vector<128x128xf32>
    %c0_5 = arith.constant 0 : index
    %c0_6 = arith.constant 0 : index
    %4 = vector.load %arg3[%c0_5, %c0_6] : memref<1x128xf32, #tpu.memory_space<vmem>>, vector<1x128xf32>
    %5 = vector.broadcast %4 : vector<1x128xf32> to vector<128x128xf32>
    %6 = arith.addf %3, %5 : vector<128x128xf32>
    %7 = vector.extract_strided_slice %1 {offsets = [0, 0], sizes = [1, 128], strides = [1, 1]} : vector<3x128xf32> to vector<1x128xf32>
    %8 = vector.broadcast %7 : vector<1x128xf32> to vector<128x128xf32>
    %9 = arith.mulf %6, %8 : vector<128x128xf32>
    %10 = arith.negf %9 : vector<128x128xf32>
    %11 = math.exp %10 : vector<128x128xf32>
    %cst_7 = arith.constant 1.000000e+00 : f32
    %12 = vector.broadcast %cst_7 : f32 to vector<128x128xf32>
    %13 = arith.addf %12, %11 : vector<128x128xf32>
    %14 = arith.divf %12, %13 : vector<128x128xf32>
    %15 = arith.mulf %6, %14 : vector<128x128xf32>
    %c0_8 = arith.constant 0 : index
    %c0_9 = arith.constant 0 : index
    %16 = vector.load %arg4[%c0_8, %c0_9] : memref<128x128xf32, #tpu.memory_space<vmem>>, vector<128x128xf32>
    %cst_10 = arith.constant dense<0.000000e+00> : vector<128x128xf32>
    %17 = tpu.matmul %15, %16, %cst_10 {dimension_numbers = #tpu.dot_dimension_numbers<[1], [0], [0], [1], [0, 0, 1, 1], [], []>} : vector<128x128xf32>, vector<128x128xf32>, vector<128x128xf32> -> vector<128x128xf32>
    %c0_11 = arith.constant 0 : index
    %c0_12 = arith.constant 0 : index
    %18 = vector.load %arg5[%c0_11, %c0_12] : memref<1x128xf32, #tpu.memory_space<vmem>>, vector<1x128xf32>
    %19 = vector.broadcast %18 : vector<1x128xf32> to vector<128x128xf32>
    %20 = arith.addf %17, %19 : vector<128x128xf32>
    %21 = vector.extract_strided_slice %1 {offsets = [1, 0], sizes = [1, 128], strides = [1, 1]} : vector<3x128xf32> to vector<1x128xf32>
    %22 = vector.broadcast %21 : vector<1x128xf32> to vector<128x128xf32>
    %23 = arith.mulf %20, %22 : vector<128x128xf32>
    %24 = arith.negf %23 : vector<128x128xf32>
    %25 = math.exp %24 : vector<128x128xf32>
    %cst_13 = arith.constant 1.000000e+00 : f32
    %26 = vector.broadcast %cst_13 : f32 to vector<128x128xf32>
    %27 = arith.addf %26, %25 : vector<128x128xf32>
    %28 = arith.divf %26, %27 : vector<128x128xf32>
    %29 = arith.mulf %20, %28 : vector<128x128xf32>
    %c0_14 = arith.constant 0 : index
    %c0_15 = arith.constant 0 : index
    %30 = vector.load %arg6[%c0_14, %c0_15] : memref<128x128xf32, #tpu.memory_space<vmem>>, vector<128x128xf32>
    %cst_16 = arith.constant dense<0.000000e+00> : vector<128x128xf32>
    %31 = tpu.matmul %29, %30, %cst_16 {dimension_numbers = #tpu.dot_dimension_numbers<[1], [0], [0], [1], [0, 0, 1, 1], [], []>} : vector<128x128xf32>, vector<128x128xf32>, vector<128x128xf32> -> vector<128x128xf32>
    %c0_17 = arith.constant 0 : index
    %c0_18 = arith.constant 0 : index
    %32 = vector.load %arg7[%c0_17, %c0_18] : memref<1x128xf32, #tpu.memory_space<vmem>>, vector<1x128xf32>
    %33 = vector.broadcast %32 : vector<1x128xf32> to vector<128x128xf32>
    %34 = arith.addf %31, %33 : vector<128x128xf32>
    %35 = vector.extract_strided_slice %1 {offsets = [2, 0], sizes = [1, 128], strides = [1, 1]} : vector<3x128xf32> to vector<1x128xf32>
    %36 = vector.broadcast %35 : vector<1x128xf32> to vector<128x128xf32>
    %37 = arith.mulf %34, %36 : vector<128x128xf32>
    %38 = arith.negf %37 : vector<128x128xf32>
    %39 = math.exp %38 : vector<128x128xf32>
    %cst_19 = arith.constant 1.000000e+00 : f32
    %40 = vector.broadcast %cst_19 : f32 to vector<128x128xf32>
    %41 = arith.addf %40, %39 : vector<128x128xf32>
    %42 = arith.divf %40, %41 : vector<128x128xf32>
    %43 = arith.mulf %34, %42 : vector<128x128xf32>
    %c0_20 = arith.constant 0 : index
    %c0_21 = arith.constant 0 : index
    %44 = vector.load %arg8[%c0_20, %c0_21] : memref<128x128xf32, #tpu.memory_space<vmem>>, vector<128x128xf32>
    %cst_22 = arith.constant dense<0.000000e+00> : vector<128x128xf32>
    %45 = tpu.matmul %43, %44, %cst_22 {dimension_numbers = #tpu.dot_dimension_numbers<[1], [0], [0], [1], [0, 0, 1, 1], [], []>} : vector<128x128xf32>, vector<128x128xf32>, vector<128x128xf32> -> vector<128x128xf32>
    %c0_23 = arith.constant 0 : index
    %c0_24 = arith.constant 0 : index
    %46 = vector.load %arg9[%c0_23, %c0_24] : memref<1x128xf32, #tpu.memory_space<vmem>>, vector<1x128xf32>
    %47 = vector.broadcast %46 : vector<1x128xf32> to vector<128x128xf32>
    %48 = arith.addf %45, %47 : vector<128x128xf32>
    %c0_25 = arith.constant 0 : index
    %c0_26 = arith.constant 0 : index
    %49 = vector.load %arg11[%c0_25, %c0_26] : memref<128x128xf32, #tpu.memory_space<vmem>>, vector<128x128xf32>
    tpu.vector_store %arg11[%c0_25, %c0_26], %48 {strides = array<i32>} : memref<128x128xf32, #tpu.memory_space<vmem>>, vector<128x128xf32>,
    return
  }
  func.func @transform_0(%arg0: i32) -> (i32, i32) {
    %c0_i32 = arith.constant 0 : i32
    %c0_i32_0 = arith.constant 0 : i32
    return %arg0, %c0_i32 : i32, i32
  }
  func.func @transform_1(%arg0: i32) -> (i32, i32) {
    %c0_i32 = arith.constant 0 : i32
    %c0_i32_0 = arith.constant 0 : i32
    %c0_i32_1 = arith.constant 0 : i32
    return %c0_i32, %c0_i32_0 : i32, i32
  }
  func.func @transform_2(%arg0: i32) -> (i32, i32) {
    %c0_i32 = arith.constant 0 : i32
    %c0_i32_0 = arith.constant 0 : i32
    %c0_i32_1 = arith.constant 0 : i32
    return %c0_i32, %c0_i32_0 : i32, i32
  }
  func.func @transform_3(%arg0: i32) -> (i32, i32) {
    %c0_i32 = arith.constant 0 : i32
    %c0_i32_0 = arith.constant 0 : i32
    %c0_i32_1 = arith.constant 0 : i32
    return %c0_i32, %c0_i32_0 : i32, i32
  }
  func.func @transform_4(%arg0: i32) -> (i32, i32) {
    %c0_i32 = arith.constant 0 : i32
    %c0_i32_0 = arith.constant 0 : i32
    %c0_i32_1 = arith.constant 0 : i32
    return %c0_i32, %c0_i32_0 : i32, i32
  }
  func.func @transform_5(%arg0: i32) -> (i32, i32) {
    %c0_i32 = arith.constant 0 : i32
    %c0_i32_0 = arith.constant 0 : i32
    %c0_i32_1 = arith.constant 0 : i32
    return %c0_i32, %c0_i32_0 : i32, i32
  }
  func.func @transform_6(%arg0: i32) -> (i32, i32) {
    %c0_i32 = arith.constant 0 : i32
    %c0_i32_0 = arith.constant 0 : i32
    %c0_i32_1 = arith.constant 0 : i32
    return %c0_i32, %c0_i32_0 : i32, i32
  }
  func.func @transform_7(%arg0: i32) -> (i32, i32) {
    %c0_i32 = arith.constant 0 : i32
    %c0_i32_0 = arith.constant 0 : i32
    %c0_i32_1 = arith.constant 0 : i32
    return %c0_i32, %c0_i32_0 : i32, i32
  }
  func.func @transform_8(%arg0: i32) -> (i32, i32) {
    %c0_i32 = arith.constant 0 : i32
    %c0_i32_0 = arith.constant 0 : i32
    %c0_i32_1 = arith.constant 0 : i32
    return %c0_i32, %c0_i32_0 : i32, i32
  }
  func.func @transform_9(%arg0: i32) -> (i32, i32) {
    %c0_i32 = arith.constant 0 : i32
    %c0_i32_0 = arith.constant 0 : i32
    %c0_i32_1 = arith.constant 0 : i32
    return %c0_i32, %c0_i32_0 : i32, i32
  }
  func.func @transform_10(%arg0: i32) -> (i32, i32) {
    %c0_i32 = arith.constant 0 : i32
    %c0_i32_0 = arith.constant 0 : i32
    return %arg0, %c0_i32 : i32, i32
  }
}

</mosaic_0001>

<bundles_post_ra>
// kernel: tpu_custom_call.1
= control target key start
LH: loop header
LB: loop body
LE: loop exit
PB: predicated region body
PF: predicated region fallthrough
CT: control target
= control target key end

     0   :  { %15 = vsyncpa [#allocation3], 0  ;;  %s3069_s0 = inlined_call_operand.vmem [shape: f32[512,16], index: 0, kind: input, shape index: {}]   ;;  %s3070_s1 = inlined_call_operand.vmem [shape: f32[16,128], index: 1, kind: input, shape index: {}]   ;;  %s3071_s2 = inlined_call_operand.vmem [shape: f32[1,128], index: 2, kind: input, shape index: {}]   ;;  %s3072_s3 = inlined_call_operand.vmem [shape: f32[128,128], index: 3, kind: input, shape index: {}]   ;;  %s3073_s4 = inlined_call_operand.vmem [shape: f32[1,128], index: 4, kind: input, shape index: {}]   ;;  %s3074_s5 = inlined_call_operand.vmem [shape: f32[128,128], index: 5, kind: input, shape index: {}]   ;;  %s3075_s6 = inlined_call_operand.vmem [shape: f32[1,128], index: 6, kind: input, shape index: {}]   ;;  %s3076_s7 = inlined_call_operand.vmem [shape: f32[128,128], index: 7, kind: input, shape index: {}]   ;;  %s3077_s8 = inlined_call_operand.vmem [shape: f32[1,128], index: 8, kind: input, shape index: {}]   ;;  %s3078_s9 = inlined_call_operand.vmem [shape: f32[3,128], index: 9, kind: input, shape index: {}]   ;;  %s3079_s10 = inlined_call_operand.hbm [shape: f32[512,128], index: 10, kind: output, shape index: {}]  }
   0x1   :  { %17 = vsyncpa [#allocation3 + $0x1], 0  ;;  %s2435_s13 = smov 0   ;;  %s2437_s14 = smov 0  }
   0x2   :  { %s2439_s15 = smov 0   ;;  %s2441_s16 = smov 0  }
   0x3 LB: > { %s2456_s17 = sadd.s32 4294967295, %s2375_s16   ;;  %s1573_s18 = sadd.s32 4294967294, %s2375_s16   ;;  %s2375_s16 = sphi %s2441_s16, %s3085_s16   ;;  %s2371_s15 = sphi %s2439_s15, %s3084_s15   ;;  %s2367_s14 = sphi %s2437_s14, %s3083_s14   ;;  %s2363_s13 = sphi %s2435_s13, %s3082_s13  }
   0x4   : > { %s2460_s19 = sadd.s32 1, %s2375_s16   ;;  %s245_s20 = sadd.s32 1, %s2371_s15 }
   0x5   : > { %s242_s21 = ssub.s32 %s2375_s16, %s2460_s19  ;;  %p255_p0 = scmp.ne.s32.totalorder %s2371_s15, %s2367_s14 }
   0x6   : > { %p243_p1 = scmp.eq.s32.totalorder %s242_s21, 0  ;;  %p256_p2 = scmp.eq.s32.totalorder %s2456_s17, 3 }
   0x7   : > { %p261_p3 = scmp.ne.s32.totalorder %s2367_s14, %s2363_s13  ;;  %p262_p4 = scmp.eq.s32.totalorder %s1573_s18, 3 }
   0x8   : > { %s2471_s22 = scalar_select %p243_p1, %s2371_s15, %s245_s20  }
   0x9   : > { %p2473_p5 = por %p256_p2, %p255_p0  ;;  %p2477_p6 = por %p262_p4, %p261_p3 }
   0xa   : > { %p1576_p7 = scmp.ge.s32.totalorder %s2375_s16, 1  ;;  %p316_p8 = scmp.lt.s32.totalorder %s2375_s16, 5 }
   0xc   : > { %p317_p9 = pnand %p1576_p7, %p316_p8 }
   0xd   : > { %v378_v0 = vld [vmem:[%s3070_s1] sm:$0xff] (!%p317_p9)  ;;  %v379_v1 = vld [vmem:[%s3070_s1 + $0x8] sm:$0xff] (!%p317_p9)  ;;  %s1578_s29 = sshll.u32 (!%p317_p9), %s2456_s17, 4  ;;  %vm387_vm0 = vcmask (!%p317_p9), 130048   ;;  %v715_v22 = vld [vmem:[%s3072_s3 + $0x10] sm:$0xff] (!%p317_p9)  ;;  %v581_v43 = vlaneseq (!%p317_p9)  ;;  %s351_s28 = sand.u32 (!%p317_p9), 1, %s2367_s14  }
   0xe   : > { %320 = sbr.rel (%p317_p9) target bundleno = 1027 (0x403), region = 60  ;;  %v1964_v2 = vpack.c.bf16 (!%p317_p9), %v379_v1, %v378_v0  ;;  %p355_p10 = scmp.lt.s32.totalorder (!%p317_p9), %s1578_s29, 63  ;;  %v713_v19 = vld [vmem:[%s3072_s3] sm:$0xff] (!%p317_p9)  ;;  %v714_v20 = vld [vmem:[%s3072_s3 + $0x8] sm:$0xff] (!%p317_p9)  ;;  %v716_v23 = vld [vmem:[%s3072_s3 + $0x18] sm:$0xff] (!%p317_p9) }
   0xf   : > { %v1968_v21 = vpack.c.bf16 (!%p317_p9), %v714_v20, %v713_v19  ;;  %v1972_v24 = vpack.c.bf16 (!%p317_p9), %v716_v23, %v715_v22  ;;  %v717_v25 = vld [vmem:[%s3072_s3 + $0x20] sm:$0xff] (!%p317_p9)  ;;  %v718_v26 = vld [vmem:[%s3072_s3 + $0x28] sm:$0xff] (!%p317_p9)  ;;  %v719_v28 = vld [vmem:[%s3072_s3 + $0x30] sm:$0xff] (!%p317_p9)  ;;  %v2575_v44 = vshrl.u32 (!%p317_p9), %v581_v43, 7 }
  0x10   : > { %1965 = vmatprep.subr.bf16.mxu0 (!%p317_p9), %v1964_v2  ;;  %v1976_v27 = vpack.c.bf16 (!%p317_p9), %v718_v26, %v717_v25  ;;  %v720_v29 = vld [vmem:[%s3072_s3 + $0x38] sm:$0xff] (!%p317_p9)  ;;  %v721_v31 = vld [vmem:[%s3072_s3 + $0x40] sm:$0xff] (!%p317_p9)  ;;  %v722_v32 = vld [vmem:[%s3072_s3 + $0x48] sm:$0xff] (!%p317_p9) }
  0x11   : > { %1967 = vmatpush3.bf16.msra.mxu0 (!%p317_p9), %v1964_v2  ;;  %1969 = vmatprep.subr.bf16.mxu1 (!%p317_p9), %v1968_v21  ;;  %v1980_v30 = vpack.c.bf16 (!%p317_p9), %v720_v29, %v719_v28  ;;  %v1984_v33 = vpack.c.bf16 (!%p317_p9), %v722_v32, %v721_v31  ;;  %v723_v34 = vld [vmem:[%s3072_s3 + $0x50] sm:$0xff] (!%p317_p9)  ;;  %v724_v35 = vld [vmem:[%s3072_s3 + $0x58] sm:$0xff] (!%p317_p9)  ;;  %v725_v37 = vld [vmem:[%s3072_s3 + $0x60] sm:$0xff] (!%p317_p9)  ;;  %v583_v45 = vsub.s32 (!%p317_p9), 0, %v2575_v44 }
  0x12   : > { %1971 = vmatpush3.bf16.msra.mxu1 (!%p317_p9), %v1968_v21  ;;  %v1988_v36 = vpack.c.bf16 (!%p317_p9), %v724_v35, %v723_v34  ;;  %v726_v38 = vld [vmem:[%s3072_s3 + $0x68] sm:$0xff] (!%p317_p9)  ;;  %v727_v40 = vld [vmem:[%s3072_s3 + $0x70] sm:$0xff] (!%p317_p9)  ;;  %v728_v41 = vld [vmem:[%s3072_s3 + $0x78] sm:$0xff] (!%p317_p9) }
  0x13   : > { %1973 = vmatprep.subr.bf16.mxu1 (!%p317_p9), %v1972_v24  ;;  %v1992_v39 = vpack.c.bf16 (!%p317_p9), %v726_v38, %v725_v37  ;;  %v1996_v42 = vpack.c.bf16 (!%p317_p9), %v728_v41, %v727_v40  ;;  %v2581_v46 = vld [vmem:[%s3078_s9] sm:$0x7] (!%p317_p9) }
  0x14   : > { %v2586_v47 = vld [vmem:[%s3071_s2] ss:$0 sm:$0xff] (!%p317_p9)  ;;  %v2589_v48 = vrot.slane (!%p317_p9), %v2581_v46, %v583_v45 }
  0x15   : > { %s3087_s29 = smov (!%p355_p10, %s1578_s29), 63 }
  0x16   : > { %s1579_s30 = sshll.u32 %s3087_s29, 3  ;;  %1975 = vmatpush3.bf16.msra.mxu1 %v1972_v24  ;;  %s1577_s29 = sshll.u32 %s351_s28, 7 }
  0x17   : > { %s2493_s18 = scalar_lea.vmem %s3069_s0, %s1579_s30  ;;  %1977 = vmatprep.subr.bf16.mxu1 %v1976_v27  ;;  %s2999_s12 = scalar_lea.vmem [#allocation2], %s1577_s29 }
  0x18   : > { %v361_v3 = vld [vmem:[%s2493_s18] sm:$0xff]  ;;  %v362_v4 = vld [vmem:[%s2493_s18 + $0x8] sm:$0xff]  ;;  %v363_v5 = vld [vmem:[%s2493_s18 + $0x10] sm:$0xff]  ;;  %s1511_s20 = sshll.u32 %s2999_s12, 4  ;;  %s2377_s29 = smov [#allocation2]   ;;  %s3022_s20 = int_to_ptr.vmem [resolvable:$true] %s1511_s20 }
  0x19   : > { %1772 = vmatprep.mubr.msk.f32.mxu0 %vm387_vm0, %v361_v3  ;;  %v364_v6 = vld [vmem:[%s2493_s18 + $0x18] sm:$0xff]  ;;  %v365_v7 = vld [vmem:[%s2493_s18 + $0x20] sm:$0xff]  ;;  %v366_v8 = vld [vmem:[%s2493_s18 + $0x28] sm:$0xff]  ;;  %s2313_s27 = scalar_lea.vmem %s3022_s20, 2048  ;;  %s2317_s30 = sshll.u32 %s2377_s29, 4  ;;  %s2318_s30 = int_to_ptr.vmem [resolvable:$false] %s2317_s30 }
  0x1a   : > { %1773 = vmatmul.mubr.msk.f32.vlgmr.msra.gmra.mrb[0].mxu0 %vm387_vm0, %v362_v4  ;;  %v367_v9 = vld [vmem:[%s2493_s18 + $0x30] sm:$0xff]  ;;  %v368_v10 = vld [vmem:[%s2493_s18 + $0x38] sm:$0xff]  ;;  %v369_v11 = vld [vmem:[%s2493_s18 + $0x40] sm:$0xff]  ;;  %1979 = vmatpush3.bf16.msra.mxu1 %v1976_v27  ;;  %p2314_p11 = scmp.ne.s32.totalorder %s3022_s20, %s2313_s27  ;;  %s2319_s11 = scalar_lea.vmem %s2318_s30, 4096 }
  0x1b   : > { %1775 = vmatprep.mubr.msk.f32.mxu0 %vm387_vm0, %v363_v5  ;;  %v370_v12 = vld [vmem:[%s2493_s18 + $0x48] sm:$0xff]  ;;  %v371_v13 = vld [vmem:[%s2493_s18 + $0x50] sm:$0xff]  ;;  %v372_v14 = vld [vmem:[%s2493_s18 + $0x58] sm:$0xff]  ;;  %1981 = vmatprep.subr.bf16.mxu1 %v1980_v30  ;;  %p2320_p0 = scmp.lt.s32.totalorder %s3022_s20, %s2318_s30  ;;  %p2321_p1 = scmp.lt.s32.totalorder %s2319_s11, %s2313_s27 }
  0x1c   : > { %v373_v15 = vld [vmem:[%s2493_s18 + $0x60] sm:$0xff]  ;;  %v374_v16 = vld [vmem:[%s2493_s18 + $0x68] sm:$0xff]  ;;  %v375_v17 = vld [vmem:[%s2493_s18 + $0x70] sm:$0xff]  ;;  %p2315_p12 = pnand %p2314_p11, %p2473_p5 }
  0x1d   : > { %v376_v18 = vld [vmem:[%s2493_s18 + $0x78] sm:$0xff]  ;;  %s1653_s18 = sshll.u32 %s2456_s17, 11  ;;  %s3028_s17 = scalar_lea.sflag [#allocation3], %s351_s28 }
  0x1e   : > { %1776 = vmatmul.mubr.msk.f32.gmra.mrb[2].mxu0 %vm387_vm0, %v364_v6  ;;  %1983 = vmatpush3.bf16.msra.mxu1 %v1980_v30  ;;  %s3020_s26 = scalar_lea.hbm %s3079_s10, %s1653_s18  ;;  %p2316_p13 = pneg %p2315_p12 }
  0x1f   : > { %1778 = vmatprep.mubr.msk.f32.mxu0 %vm387_vm0, %v365_v7  ;;  %1985 = vmatprep.subr.bf16.mxu1 %v1984_v33  ;;  %p2322_p2 = por %p2321_p1, %p2320_p0 }
  0x21   : > { %p2323_p3 = pnand %p2322_p2, %p2316_p13 }
  0x22   : > { %1779 = vmatmul.mubr.msk.f32.gmra.mrb[4].mxu0 %vm387_vm0, %v366_v8  ;;  %1987 = vmatpush3.bf16.msra.mxu1 %v1984_v33 }
  0x23   : > { %1781 = vmatprep.mubr.msk.f32.mxu0 %vm387_vm0, %v367_v9  ;;  %1989 = vmatprep.subr.bf16.mxu1 %v1988_v36 }
  0x26   : > { %1782 = vmatmul.mubr.msk.f32.gmra.mrb[6].mxu0 %vm387_vm0, %v368_v10  ;;  %1991 = vmatpush3.bf16.msra.mxu1 %v1988_v36 }
  0x27   : > { %1784 = vmatprep.mubr.msk.f32.mxu0 %vm387_vm0, %v369_v11  ;;  %1993 = vmatprep.subr.bf16.mxu1 %v1992_v39 }
  0x2a   : > { %1785 = vmatmul.mubr.msk.f32.gmra.mrb[8].mxu0 %vm387_vm0, %v370_v12  ;;  %1995 = vmatpush3.bf16.msra.mxu1 %v1992_v39 }
  0x2b   : > { %1787 = vmatprep.mubr.msk.f32.mxu0 %vm387_vm0, %v371_v13  ;;  %1997 = vmatprep.subr.bf16.mxu1 %v1996_v42 }
  0x2e   : > { %1788 = vmatmul.mubr.msk.f32.gmra.mrb[10].mxu0 %vm387_vm0, %v372_v14  ;;  %1999 = vmatpush3.bf16.msra.mxu1 %v1996_v42 }
  0x2f   : > { %1790 = vmatprep.mubr.msk.f32.mxu0 %vm387_vm0, %v373_v15 }
  0x32   : > { %1791 = vmatmul.mubr.msk.f32.gmra.mrb[12].mxu0 %vm387_vm0, %v374_v16 }
  0x33   : > { %1793 = vmatprep.mubr.msk.f32.mxu0 %vm387_vm0, %v375_v17 }
  0x36   : > { %1794 = vmatmul.mubr.msk.f32.gmra.mrb[14].mxu0 %vm387_vm0, %v376_v18 }
  0xed   : > { %v1774_v49 = vpop.f32.mrb[0].mxu0 }
  0xee   : > { %v2592_v50 = vadd.f32 %v1774_v49, %v2586_v47  ;;  %v502_v51 = vpop.f32.mrb[1].mxu0 }
  0xef   : > { %v2595_v52 = vadd.f32 %v2586_v47, %v502_v51 }
  0xf0   : > { %v586_v53 = vmul.f32 %v2589_v48, %v2592_v50 }
  0xf1   : > { %v585_v54 = vmul.f32 %v2589_v48, %v2595_v52  ;;  %v1777_v55 = vpop.f32.mrb[2].mxu0 }
  0xf2   : > { %v1598_v56 = vmul.f32 -1.442695, %v586_v53  ;;  %v2602_v57 = vadd.f32 %v1777_v55, %v2586_v47  ;;  %v512_v58 = vpop.f32.mrb[3].mxu0 }
  0xf3   : > { %v1597_v59 = vmul.f32 -1.442695, %v585_v54  ;;  %v2605_v60 = vadd.f32 %v2586_v47, %v512_v58 }
  0xf4   : > { %2121 = vpow2.f32 %v1598_v56  ;;  %v588_v61 = vmul.f32 %v2589_v48, %v2602_v57 }
  0xf5   : > { %2123 = vpow2.f32 %v1597_v59  ;;  %v587_v62 = vmul.f32 %v2589_v48, %v2605_v60  ;;  %v1780_v63 = vpop.f32.mrb[4].mxu0 }
  0xf6   : > { %v1600_v0 = vmul.f32 -1.442695, %v588_v61  ;;  %v2612_v1 = vadd.f32 %v1780_v63, %v2586_v47  ;;  %v522_v2 = vpop.f32.mrb[5].mxu0 }
  0xf7   : > { %v1599_v3 = vmul.f32 -1.442695, %v587_v62  ;;  %v2615_v4 = vadd.f32 %v2586_v47, %v522_v2 }
  0xf8   : > { %2125 = vpow2.f32 %v1600_v0  ;;  %v590_v5 = vmul.f32 %v2589_v48, %v2612_v1 }
  0xf9   : > { %2127 = vpow2.f32 %v1599_v3  ;;  %v589_v6 = vmul.f32 %v2589_v48, %v2615_v4  ;;  %v1783_v7 = vpop.f32.mrb[6].mxu0 }
  0xfa   : > { %v1602_v8 = vmul.f32 -1.442695, %v590_v5  ;;  %v2622_v9 = vadd.f32 %v1783_v7, %v2586_v47  ;;  %v532_v10 = vpop.f32.mrb[7].mxu0 }
  0xfb   : > { %v1601_v11 = vmul.f32 -1.442695, %v589_v6  ;;  %v2625_v12 = vadd.f32 %v2586_v47, %v532_v10 }
  0xfc   : > { %2129 = vpow2.f32 %v1602_v8  ;;  %v592_v13 = vmul.f32 %v2589_v48, %v2622_v9 }
  0xfd   : > { %2131 = vpow2.f32 %v1601_v11  ;;  %v591_v14 = vmul.f32 %v2589_v48, %v2625_v12  ;;  %v1786_v15 = vpop.f32.mrb[8].mxu0 }
  0xfe   : > { %v2122_v16 = vpop.eup %2121  ;;  %v1604_v17 = vmul.f32 -1.442695, %v592_v13  ;;  %v2632_v18 = vadd.f32 %v1786_v15, %v2586_v47  ;;  %v542_v19 = vpop.f32.mrb[9].mxu0 }
  0xff   : > { %v2124_v20 = vpop.eup %2123  ;;  %v650_v21 = vadd.f32 1.0, %v2122_v16  ;;  %v1603_v22 = vmul.f32 -1.442695, %v591_v14  ;;  %v2635_v23 = vadd.f32 %v2586_v47, %v542_v19 }
 0x100   : > { %v649_v24 = vadd.f32 1.0, %v2124_v20  ;;  %2133 = vpow2.f32 %v1604_v17  ;;  %v594_v25 = vmul.f32 %v2589_v48, %v2632_v18 }
 0x101   : > { %2135 = vrcp.f32 %v650_v21  ;;  %v593_v26 = vmul.f32 %v2589_v48, %v2635_v23  ;;  %v1789_v27 = vpop.f32.mrb[10].mxu0 }
 0x102   : > { %v2126_v28 = vpop.eup %2125  ;;  %2137 = vrcp.f32 %v649_v24  ;;  %v1606_v29 = vmul.f32 -1.442695, %v594_v25  ;;  %v2642_v30 = vadd.f32 %v1789_v27, %v2586_v47  ;;  %v552_v31 = vpop.f32.mrb[11].mxu0 }
 0x103   : > { %v2128_v32 = vpop.eup %2127  ;;  %v652_v33 = vadd.f32 1.0, %v2126_v28  ;;  %2139 = vpow2.f32 %v1603_v22  ;;  %v1605_v34 = vmul.f32 -1.442695, %v593_v26  ;;  %v2645_v35 = vadd.f32 %v2586_v47, %v552_v31 }
 0x104   : > { %v651_v36 = vadd.f32 1.0, %v2128_v32  ;;  %2141 = vpow2.f32 %v1606_v29  ;;  %v596_v37 = vmul.f32 %v2589_v48, %v2642_v30 }
 0x105   : > { %2143 = vrcp.f32 %v652_v33  ;;  %v595_v38 = vmul.f32 %v2589_v48, %v2645_v35  ;;  %v1792_v39 = vpop.f32.mrb[12].mxu0 }
 0x106   : > { %v2130_v40 = vpop.eup %2129  ;;  %2145 = vrcp.f32 %v651_v36  ;;  %v1608_v41 = vmul.f32 -1.442695, %v596_v37  ;;  %v2652_v42 = vadd.f32 %v1792_v39, %v2586_v47  ;;  %v562_v43 = vpop.f32.mrb[13].mxu0 }
 0x107   : > { %v2132_v45 = vpop.eup %2131  ;;  %v654_v49 = vadd.f32 1.0, %v2130_v40  ;;  %2147 = vpow2.f32 %v1605_v34  ;;  %v1607_v51 = vmul.f32 -1.442695, %v595_v38  ;;  %v2655_v53 = vadd.f32 %v2586_v47, %v562_v43 }
 0x108   : > { %v653_v54 = vadd.f32 1.0, %v2132_v45  ;;  %2149 = vpow2.f32 %v1608_v41  ;;  %v598_v55 = vmul.f32 %v2589_v48, %v2652_v42 }
 0x109   : > { %2151 = vrcp.f32 %v654_v49  ;;  %v597_v56 = vmul.f32 %v2589_v48, %v2655_v53  ;;  %v1795_v58 = vpop.f32.mrb[14].mxu0 }
 0x10a   : > { %v2134_v59 = vpop.eup %2133  ;;  %2153 = vrcp.f32 %v653_v54  ;;  %v1610_v61 = vmul.f32 -1.442695, %v598_v55  ;;  %v2662_v62 = vadd.f32 %v1795_v58, %v2586_v47  ;;  %v572_v63 = vpop.f32.mrb[15].mxu0 }
 0x10b   : > { %v2136_v0 = vpop.eup %2135  ;;  %v656_v2 = vadd.f32 1.0, %v2134_v59  ;;  %2155 = vpow2.f32 %v1607_v51  ;;  %v1609_v3 = vmul.f32 -1.442695, %v597_v56  ;;  %v2665_v5 = vadd.f32 %v2586_v47, %v572_v63 }
 0x10c   : > { %v2138_v6 = vpop.eup %2137  ;;  %2157 = vpow2.f32 %v1610_v61  ;;  %v600_v7 = vmul.f32 %v2589_v48, %v2662_v62  ;;  %v698_v14 = vmul.f32 %v2136_v0, %v2592_v50 }
 0x10d   : > { %v2140_v8 = vpop.eup %2139  ;;  %v599_v10 = vmul.f32 %v2589_v48, %v2665_v5  ;;  %v697_v11 = vmul.f32 %v2138_v6, %v2595_v52  ;;  %2159 = vpow2.f32 %v1609_v3  ;;  %v1018_v3 = vld [vmem:[%s3074_s5 + $0x28] sm:$0xff]  ;;  %v1019_v6 = vld [vmem:[%s3074_s5 + $0x30] sm:$0xff] }
 0x10e   : > { %v2142_v13 = vpop.eup %2141  ;;  %v655_v15 = vadd.f32 1.0, %v2140_v8  ;;  %v1612_v16 = vmul.f32 -1.442695, %v600_v7  ;;  %2161 = vrcp.f32 %v656_v2  ;;  %v1017_v2 = vld [vmem:[%s3074_s5 + $0x20] sm:$0xff]  ;;  %v1020_v7 = vld [vmem:[%s3074_s5 + $0x38] sm:$0xff] }
 0x10f   : > { %v2144_v17 = vpop.eup %2143  ;;  %v658_v47 = vadd.f32 1.0, %v2142_v13  ;;  %v1611_v19 = vmul.f32 -1.442695, %v599_v10  ;;  %1828 = vmatprep.mubr.f32.mxu1 %v697_v11  ;;  %v2012_v8 = vpack.c.bf16 %v1020_v7, %v1019_v6  ;;  %v1021_v10 = vld [vmem:[%s3074_s5 + $0x40] sm:$0xff]  ;;  %v1022_v11 = vld [vmem:[%s3074_s5 + $0x48] sm:$0xff] }
 0x110   : > { %v2146_v20 = vpop.eup %2145  ;;  %2163 = vrcp.f32 %v655_v15  ;;  %1829 = vmatmul.mubr.f32.vlgmr.msra.gmra.mrb[0].mxu1 %v698_v14  ;;  %v700_v52 = vmul.f32 %v2144_v17, %v2602_v57  ;;  %v2016_v13 = vpack.c.bf16 %v1022_v11, %v1021_v10  ;;  %v1023_v14 = vld [vmem:[%s3074_s5 + $0x50] sm:$0xff]  ;;  %v1024_v15 = vld [vmem:[%s3074_s5 + $0x58] sm:$0xff]  ;;  %v1025_v17 = vld [vmem:[%s3074_s5 + $0x60] sm:$0xff] }
 0x111   : > { %v2148_v21 = vpop.eup %2147  ;;  %v699_v22 = vmul.f32 %v2146_v20, %v2605_v60  ;;  %2165 = vrcp.f32 %v658_v47  ;;  %v1026_v47 = vld [vmem:[%s3074_s5 + $0x68] sm:$0xff]  ;;  %v1027_v20 = vld [vmem:[%s3074_s5 + $0x70] sm:$0xff] }
 0x112   : > { %v2150_v48 = vpop.eup %2149  ;;  %v657_v24 = vadd.f32 1.0, %v2148_v21  ;;  %2167 = vpow2.f32 %v1612_v16  ;;  %v2020_v16 = vpack.c.bf16 %v1024_v15, %v1023_v14  ;;  %v1028_v21 = vld [vmem:[%s3074_s5 + $0x78] sm:$0xff] }
 0x113   : > { %v2152_v50 = vpop.eup %2151  ;;  %v660_v25 = vadd.f32 1.0, %v2150_v48  ;;  %2169 = vpow2.f32 %v1611_v19  ;;  %1831 = vmatprep.mubr.f32.mxu1 %v699_v22  ;;  %v2024_v19 = vpack.c.bf16 %v1026_v47, %v1025_v17  ;;  %v2028_v22 = vpack.c.bf16 %v1028_v21, %v1027_v20 }
 0x114   : > { %v2154_v26 = vpop.eup %2153  ;;  %2171 = vrcp.f32 %v657_v24  ;;  %1832 = vmatmul.mubr.f32.gmra.mrb[2].mxu1 %v700_v52  ;;  %v702_v31 = vmul.f32 %v2152_v50, %v2612_v1  ;;  %v883_v48 = vsub.s32 1, %v2575_v44  ;;  %v2739_v52 = vld [vmem:[%s3073_s4] ss:$0 sm:$0xff] }
 0x115   : > { %v2156_v27 = vpop.eup %2155  ;;  %v701_v28 = vmul.f32 %v2154_v26, %v2615_v4  ;;  %2173 = vrcp.f32 %v660_v25 }
 0x116   : > { %v2158_v29 = vpop.eup %2157  ;;  %v659_v60 = vadd.f32 1.0, %v2156_v27  ;;  %v2742_v24 = vrot.slane %v2581_v46, %v883_v48 }
 0x117   : > { %v662_v32 = vadd.f32 1.0, %v2158_v29  ;;  %1834 = vmatprep.mubr.f32.mxu1 %v701_v28  ;;  %v2160_v57 = vpop.eup %2159 }
 0x118   : > { %2175 = vrcp.f32 %v659_v60  ;;  %1835 = vmatmul.mubr.f32.gmra.mrb[4].mxu1 %v702_v31  ;;  %v2162_v33 = vpop.eup %2161  ;;  %v661_v34 = vadd.f32 1.0, %v2160_v57 }
 0x119   : > { %2177 = vrcp.f32 %v662_v32  ;;  %v704_v4 = vmul.f32 %v2162_v33, %v2622_v9 }
 0x11a   : > { %v2164_v36 = vpop.eup %2163  ;;  %2179 = vrcp.f32 %v661_v34 }
 0x11b   : > { %v2166_v37 = vpop.eup %2165  ;;  %v703_v38 = vmul.f32 %v2164_v36, %v2625_v12 }
 0x11c   : > { %v2168_v39 = vpop.eup %2167  ;;  %v706_v49 = vmul.f32 %v2166_v37, %v2632_v18 }
 0x11d   : > { %v2170_v40 = vpop.eup %2169  ;;  %v664_v1 = vadd.f32 1.0, %v2168_v39  ;;  %1837 = vmatprep.mubr.f32.mxu1 %v703_v38 }
 0x11e   : > { %v2172_v41 = vpop.eup %2171  ;;  %v663_v43 = vadd.f32 1.0, %v2170_v40  ;;  %1838 = vmatmul.mubr.f32.gmra.mrb[6].mxu1 %v704_v4 }
 0x11f   : > { %v705_v45 = vmul.f32 %v2172_v41, %v2635_v23  ;;  %2181 = vrcp.f32 %v664_v1  ;;  %v2174_v51 = vpop.eup %2173 }
 0x120   : > { %2183 = vrcp.f32 %v663_v43  ;;  %v708_v9 = vmul.f32 %v2174_v51, %v2642_v30  ;;  %v1013_v30 = vld [vmem:[%s3074_s5] sm:$0xff] }
 0x121   : > { %1840 = vmatprep.mubr.f32.mxu1 %v705_v45 }
 0x122   : > { %v2176_v54 = vpop.eup %2175  ;;  %1841 = vmatmul.mubr.f32.gmra.mrb[8].mxu1 %v706_v49 }
 0x123   : > { %v707_v12 = vmul.f32 %v2176_v54, %v2645_v35  ;;  %v2178_v55 = vpop.eup %2177  ;;  %v1014_v35 = vld [vmem:[%s3074_s5 + $0x8] sm:$0xff] }
 0x124   : > { %v2180_v56 = vpop.eup %2179  ;;  %v710_v23 = vmul.f32 %v2178_v55, %v2652_v42  ;;  %v1015_v42 = vld [vmem:[%s3074_s5 + $0x10] sm:$0xff] }
 0x125   : > { %1843 = vmatprep.mubr.f32.mxu1 %v707_v12  ;;  %v709_v58 = vmul.f32 %v2180_v56, %v2655_v53  ;;  %v2000_v53 = vpack.c.bf16 %v1014_v35, %v1013_v30 }
 0x126   : > { %1844 = vmatmul.mubr.f32.gmra.mrb[10].mxu1 %v708_v9 }
 0x127   : > { %1846 = vmatprep.mubr.f32.mxu1 %v709_v58  ;;  %2001 = vmatprep.subr.bf16.mxu0 %v2000_v53 }
 0x128   : > { %2003 = vmatpush3.bf16.msra.mxu0 %v2000_v53 }
 0x129   : > { %v2182_v59 = vpop.eup %2181 }
 0x12a   : > { %v2184_v18 = vpop.eup %2183  ;;  %1847 = vmatmul.mubr.f32.gmra.mrb[12].mxu1 %v710_v23  ;;  %v712_v63 = vmul.f32 %v2182_v59, %v2662_v62  ;;  %v1016_v62 = vld [vmem:[%s3074_s5 + $0x18] sm:$0xff] }
 0x12b   : > { %v711_v61 = vmul.f32 %v2184_v18, %v2665_v5  ;;  %v2004_v0 = vpack.c.bf16 %v1016_v62, %v1015_v42  ;;  %v2008_v5 = vpack.c.bf16 %v1018_v3, %v1017_v2 }
 0x12d   : > { %1849 = vmatprep.mubr.f32.mxu1 %v711_v61  ;;  %2005 = vmatprep.subr.bf16.mxu0 %v2004_v0 }
 0x12e   : > { %1850 = vmatmul.mubr.f32.gmra.mrb[14].mxu1 %v712_v63  ;;  %2007 = vmatpush3.bf16.msra.mxu0 %v2004_v0 }
 0x12f   : > { %2009 = vmatprep.subr.bf16.mxu0 %v2008_v5 }
 0x132   : > { %2011 = vmatpush3.bf16.msra.mxu0 %v2008_v5 }
 0x133   : > { %2013 = vmatprep.subr.bf16.mxu0 %v2012_v8 }
 0x136   : > { %2015 = vmatpush3.bf16.msra.mxu0 %v2012_v8 }
 0x137   : > { %2017 = vmatprep.subr.bf16.mxu0 %v2016_v13 }
 0x13a   : > { %2019 = vmatpush3.bf16.msra.mxu0 %v2016_v13 }
 0x13b   : > { %2021 = vmatprep.subr.bf16.mxu0 %v2020_v16 }
 0x13e   : > { %2023 = vmatpush3.bf16.msra.mxu0 %v2020_v16 }
 0x13f   : > { %2025 = vmatprep.subr.bf16.mxu0 %v2024_v19 }
 0x142   : > { %2027 = vmatpush3.bf16.msra.mxu0 %v2024_v19 }
 0x143   : > { %2029 = vmatprep.subr.bf16.mxu0 %v2028_v22 }
 0x146   : > { %2031 = vmatpush3.bf16.msra.mxu0 %v2028_v22 }
 0x1e3   : > { %v1830_v50 = vpop.f32.mrb[0].mxu1 }
 0x1e4   : > { %v2745_v25 = vadd.f32 %v1830_v50, %v2739_v52  ;;  %v802_v26 = vpop.f32.mrb[1].mxu1 }
 0x1e5   : > { %v2748_v27 = vadd.f32 %v2739_v52, %v802_v26 }
 0x1e6   : > { %v886_v28 = vmul.f32 %v2742_v24, %v2745_v25 }
 0x1e7   : > { %v885_v29 = vmul.f32 %v2742_v24, %v2748_v27  ;;  %v1833_v31 = vpop.f32.mrb[2].mxu1 }
 0x1e8   : > { %v1615_v60 = vmul.f32 -1.442695, %v886_v28  ;;  %v2755_v32 = vadd.f32 %v1833_v31, %v2739_v52  ;;  %v812_v57 = vpop.f32.mrb[3].mxu1 }
 0x1e9   : > { %v1614_v33 = vmul.f32 -1.442695, %v885_v29  ;;  %v2758_v34 = vadd.f32 %v2739_v52, %v812_v57 }
 0x1ea   : > { %2185 = vpow2.f32 %v1615_v60  ;;  %v888_v36 = vmul.f32 %v2742_v24, %v2755_v32 }
 0x1eb   : > { %2187 = vpow2.f32 %v1614_v33  ;;  %v887_v37 = vmul.f32 %v2742_v24, %v2758_v34  ;;  %v1836_v38 = vpop.f32.mrb[4].mxu1 }
 0x1ec   : > { %v1617_v39 = vmul.f32 -1.442695, %v888_v36  ;;  %v2765_v4 = vadd.f32 %v1836_v38, %v2739_v52  ;;  %v822_v40 = vpop.f32.mrb[5].mxu1 }
 0x1ed   : > { %v1616_v1 = vmul.f32 -1.442695, %v887_v37  ;;  %v2768_v41 = vadd.f32 %v2739_v52, %v822_v40 }
 0x1ee   : > { %2189 = vpow2.f32 %v1617_v39  ;;  %v890_v43 = vmul.f32 %v2742_v24, %v2765_v4 }
 0x1ef   : > { %2191 = vpow2.f32 %v1616_v1  ;;  %v889_v45 = vmul.f32 %v2742_v24, %v2768_v41 }
 0x1f0   : > { %v1619_v49 = vmul.f32 -1.442695, %v890_v43 }
 0x1f1   : > { %v1618_v51 = vmul.f32 -1.442695, %v889_v45  ;;  %v1839_v54 = vpop.f32.mrb[6].mxu1 }
 0x1f2   : > { %2193 = vpow2.f32 %v1619_v49  ;;  %v2775_v12 = vadd.f32 %v1839_v54, %v2739_v52  ;;  %v832_v55 = vpop.f32.mrb[7].mxu1 }
 0x1f3   : > { %2195 = vpow2.f32 %v1618_v51  ;;  %v2778_v9 = vadd.f32 %v2739_v52, %v832_v55 }
 0x1f4   : > { %v2186_v56 = vpop.eup %2185  ;;  %v892_v58 = vmul.f32 %v2742_v24, %v2775_v12 }
 0x1f5   : > { %v2188_v23 = vpop.eup %2187  ;;  %v950_v59 = vadd.f32 1.0, %v2186_v56  ;;  %v891_v18 = vmul.f32 %v2742_v24, %v2778_v9  ;;  %v1842_v61 = vpop.f32.mrb[8].mxu1 }
 0x1f6   : > { %v949_v63 = vadd.f32 1.0, %v2188_v23  ;;  %v1621_v30 = vmul.f32 -1.442695, %v892_v58  ;;  %v2785_v35 = vadd.f32 %v1842_v61, %v2739_v52  ;;  %v842_v53 = vpop.f32.mrb[9].mxu1 }
 0x1f7   : > { %2197 = vrcp.f32 %v950_v59  ;;  %v1620_v42 = vmul.f32 -1.442695, %v891_v18  ;;  %v2788_v62 = vadd.f32 %v2739_v52, %v842_v53 }
 0x1f8   : > { %v2190_v0 = vpop.eup %2189  ;;  %2199 = vrcp.f32 %v949_v63  ;;  %v894_v2 = vmul.f32 %v2742_v24, %v2785_v35 }
 0x1f9   : > { %v2192_v3 = vpop.eup %2191  ;;  %v952_v5 = vadd.f32 1.0, %v2190_v0  ;;  %2201 = vpow2.f32 %v1621_v30  ;;  %v893_v6 = vmul.f32 %v2742_v24, %v2788_v62  ;;  %v1845_v7 = vpop.f32.mrb[10].mxu1 }
 0x1fa   : > { %v951_v8 = vadd.f32 1.0, %v2192_v3  ;;  %2203 = vpow2.f32 %v1620_v42  ;;  %v1623_v10 = vmul.f32 -1.442695, %v894_v2  ;;  %v2795_v11 = vadd.f32 %v1845_v7, %v2739_v52  ;;  %v852_v13 = vpop.f32.mrb[11].mxu1 }
 0x1fb   : > { %2205 = vrcp.f32 %v952_v5  ;;  %v1622_v14 = vmul.f32 -1.442695, %v893_v6  ;;  %v2798_v15 = vadd.f32 %v2739_v52, %v852_v13 }
 0x1fc   : > { %v2194_v16 = vpop.eup %2193  ;;  %2207 = vrcp.f32 %v951_v8  ;;  %v896_v17 = vmul.f32 %v2742_v24, %v2795_v11 }
 0x1fd   : > { %v2196_v47 = vpop.eup %2195  ;;  %v954_v19 = vadd.f32 1.0, %v2194_v16  ;;  %2209 = vpow2.f32 %v1623_v10  ;;  %v895_v20 = vmul.f32 %v2742_v24, %v2798_v15  ;;  %v1848_v21 = vpop.f32.mrb[12].mxu1 }
 0x1fe   : > { %v953_v22 = vadd.f32 1.0, %v2196_v47  ;;  %2211 = vpow2.f32 %v1622_v14  ;;  %v1625_v48 = vmul.f32 -1.442695, %v896_v17  ;;  %v2805_v50 = vadd.f32 %v1848_v21, %v2739_v52  ;;  %v862_v26 = vpop.f32.mrb[13].mxu1 }
 0x1ff   : > { %2213 = vrcp.f32 %v954_v19  ;;  %v1624_v28 = vmul.f32 -1.442695, %v895_v20  ;;  %v2808_v29 = vadd.f32 %v2739_v52, %v862_v26 }
 0x200   : > { %2215 = vrcp.f32 %v953_v22  ;;  %v898_v31 = vmul.f32 %v2742_v24, %v2805_v50 }
 0x201   : > { %v2198_v60 = vpop.eup %2197  ;;  %2217 = vpow2.f32 %v1625_v48  ;;  %v897_v57 = vmul.f32 %v2742_v24, %v2808_v29  ;;  %v1851_v33 = vpop.f32.mrb[14].mxu1 }
 0x202   : > { %v2200_v36 = vpop.eup %2199  ;;  %2219 = vpow2.f32 %v1624_v28  ;;  %v1627_v37 = vmul.f32 -1.442695, %v898_v31  ;;  %v2815_v38 = vadd.f32 %v1851_v33, %v2739_v52  ;;  %v872_v39 = vpop.f32.mrb[15].mxu1  ;;  %v998_v51 = vmul.f32 %v2198_v60, %v2745_v25 }
 0x203   : > { %v2202_v40 = vpop.eup %2201  ;;  %v997_v1 = vmul.f32 %v2200_v36, %v2748_v27  ;;  %v1626_v43 = vmul.f32 -1.442695, %v897_v57  ;;  %v2819_v45 = vadd.f32 %v2739_v52, %v872_v39 }
 0x204   : > { %v2204_v49 = vpop.eup %2203  ;;  %v956_v54 = vadd.f32 1.0, %v2202_v40  ;;  %2221 = vpow2.f32 %v1627_v37  ;;  %v900_v55 = vmul.f32 %v2742_v24, %v2815_v38  ;;  %v1317_v40 = vld [vmem:[%s3076_s7 + $0x20] sm:$0xff] }
 0x205   : > { %v2206_v56 = vpop.eup %2205  ;;  %v955_v58 = vadd.f32 1.0, %v2204_v49  ;;  %2223 = vpow2.f32 %v1626_v43  ;;  %v899_v23 = vmul.f32 %v2742_v24, %v2819_v45  ;;  %1884 = vmatprep.mubr.f32.mxu0 %v997_v1  ;;  %v1318_v1 = vld [vmem:[%s3076_s7 + $0x28] sm:$0xff]  ;;  %v1320_v49 = vld [vmem:[%s3076_s7 + $0x38] sm:$0xff] }
 0x206   : > { %v2208_v27 = vpop.eup %2207  ;;  %2225 = vrcp.f32 %v956_v54  ;;  %v1629_v59 = vmul.f32 -1.442695, %v900_v55  ;;  %1885 = vmatmul.mubr.f32.vlgmr.msra.gmra.mrb[16].mxu0 %v998_v51  ;;  %v1000_v63 = vmul.f32 %v2206_v56, %v2755_v32  ;;  %v2040_v43 = vpack.c.bf16 %v1318_v1, %v1317_v40  ;;  %v1321_v54 = vld [vmem:[%s3076_s7 + $0x40] sm:$0xff]  ;;  %v1322_v55 = vld [vmem:[%s3076_s7 + $0x48] sm:$0xff] }
 0x207   : > { %v2210_v52 = vpop.eup %2209  ;;  %v999_v18 = vmul.f32 %v2208_v27, %v2758_v34  ;;  %2227 = vrcp.f32 %v955_v58  ;;  %v1628_v25 = vmul.f32 -1.442695, %v899_v23  ;;  %v2048_v56 = vpack.c.bf16 %v1322_v55, %v1321_v54  ;;  %v1323_v58 = vld [vmem:[%s3076_s7 + $0x50] sm:$0xff]  ;;  %v1324_v23 = vld [vmem:[%s3076_s7 + $0x58] sm:$0xff] }
 0x208   : > { %v2212_v61 = vpop.eup %2211  ;;  %v958_v30 = vadd.f32 1.0, %v2210_v52  ;;  %2229 = vpow2.f32 %v1629_v59  ;;  %v2052_v27 = vpack.c.bf16 %v1324_v23, %v1323_v58  ;;  %v1325_v59 = vld [vmem:[%s3076_s7 + $0x60] sm:$0xff]  ;;  %v1326_v52 = vld [vmem:[%s3076_s7 + $0x68] sm:$0xff] }
 0x209   : > { %v2214_v53 = vpop.eup %2213  ;;  %v957_v42 = vadd.f32 1.0, %v2212_v61  ;;  %2231 = vpow2.f32 %v1628_v25  ;;  %1887 = vmatprep.mubr.f32.mxu0 %v999_v18  ;;  %v2056_v18 = vpack.c.bf16 %v1326_v52, %v1325_v59  ;;  %v1327_v25 = vld [vmem:[%s3076_s7 + $0x70] sm:$0xff]  ;;  %v1328_v61 = vld [vmem:[%s3076_s7 + $0x78] sm:$0xff] }
 0x20a   : > { %v2216_v24 = vpop.eup %2215  ;;  %2233 = vrcp.f32 %v958_v30  ;;  %1888 = vmatmul.mubr.f32.gmra.mrb[18].mxu0 %v1000_v63  ;;  %v1002_v34 = vmul.f32 %v2214_v53, %v2765_v4  ;;  %v2060_v63 = vpack.c.bf16 %v1328_v61, %v1327_v25  ;;  %v1183_v30 = vsub.s32 2, %v2575_v44  ;;  %v2892_v53 = vld [vmem:[%s3075_s6] ss:$0 sm:$0xff] }
 0x20b   : > { %v2218_v0 = vpop.eup %2217  ;;  %v1001_v2 = vmul.f32 %v2216_v24, %v2768_v41  ;;  %2235 = vrcp.f32 %v957_v42 }
 0x20c   : > { %v2220_v3 = vpop.eup %2219  ;;  %v960_v5 = vadd.f32 1.0, %v2218_v0  ;;  %v2895_v42 = vrot.slane %v2581_v46, %v1183_v30 }
 0x20d   : > { %v959_v6 = vadd.f32 1.0, %v2220_v3  ;;  %1890 = vmatprep.mubr.f32.mxu0 %v1001_v2 }
 0x20e   : > { %v2222_v32 = vpop.eup %2221  ;;  %2237 = vrcp.f32 %v960_v5  ;;  %1891 = vmatmul.mubr.f32.gmra.mrb[20].mxu0 %v1002_v34 }
 0x20f   : > { %v2224_v7 = vpop.eup %2223  ;;  %2239 = vrcp.f32 %v959_v6  ;;  %v962_v8 = vadd.f32 1.0, %v2222_v32 }
 0x210   : > { %v2226_v10 = vpop.eup %2225  ;;  %v961_v13 = vadd.f32 1.0, %v2224_v7 }
 0x211   : > { %v2228_v14 = vpop.eup %2227  ;;  %2241 = vrcp.f32 %v962_v8  ;;  %v1004_v4 = vmul.f32 %v2226_v10, %v2775_v12 }
 0x212   : > { %v2230_v16 = vpop.eup %2229  ;;  %v1003_v41 = vmul.f32 %v2228_v14, %v2778_v9  ;;  %2243 = vrcp.f32 %v961_v13 }
 0x213   : > { %v2232_v17 = vpop.eup %2231  ;;  %v964_v47 = vadd.f32 1.0, %v2230_v16 }
 0x214   : > { %v2234_v19 = vpop.eup %2233  ;;  %v963_v20 = vadd.f32 1.0, %v2232_v17  ;;  %1893 = vmatprep.mubr.f32.mxu0 %v1003_v41 }
 0x215   : > { %v2236_v21 = vpop.eup %2235  ;;  %2245 = vrcp.f32 %v964_v47  ;;  %1894 = vmatmul.mubr.f32.gmra.mrb[22].mxu0 %v1004_v4  ;;  %v1006_v48 = vmul.f32 %v2234_v19, %v2785_v35 }
 0x216   : > { %v1005_v22 = vmul.f32 %v2236_v21, %v2788_v62  ;;  %2247 = vrcp.f32 %v963_v20 }
 0x218   : > { %v2238_v26 = vpop.eup %2237  ;;  %1896 = vmatprep.mubr.f32.mxu0 %v1005_v22 }
 0x219   : > { %v2240_v28 = vpop.eup %2239  ;;  %1897 = vmatmul.mubr.f32.gmra.mrb[24].mxu0 %v1006_v48  ;;  %v1008_v12 = vmul.f32 %v2238_v26, %v2795_v11  ;;  %v1313_v11 = vld [vmem:[%s3076_s7] sm:$0xff] }
 0x21a   : > { %v1007_v9 = vmul.f32 %v2240_v28, %v2798_v15  ;;  %v1314_v15 = vld [vmem:[%s3076_s7 + $0x8] sm:$0xff] }
 0x21b   : > { %v2242_v31 = vpop.eup %2241 }
 0x21c   : > { %v2244_v60 = vpop.eup %2243  ;;  %1899 = vmatprep.mubr.f32.mxu0 %v1007_v9  ;;  %v1010_v62 = vmul.f32 %v2242_v31, %v2805_v50  ;;  %v1315_v50 = vld [vmem:[%s3076_s7 + $0x10] sm:$0xff] }
 0x21d   : > { %v1009_v57 = vmul.f32 %v2244_v60, %v2808_v29  ;;  %1900 = vmatmul.mubr.f32.gmra.mrb[26].mxu0 %v1008_v12  ;;  %v2032_v29 = vpack.c.bf16 %v1314_v15, %v1313_v11 }
 0x21f   : > { %v2246_v33 = vpop.eup %2245  ;;  %1902 = vmatprep.mubr.f32.mxu0 %v1009_v57  ;;  %2033 = vmatprep.subr.bf16.mxu0 %v2032_v29 }
 0x220   : > { %v2248_v36 = vpop.eup %2247  ;;  %v1012_v37 = vmul.f32 %v2246_v33, %v2815_v38  ;;  %2064 = vmatprep.subr.bf16.mxu1 %v2032_v29  ;;  %2035 = vmatpush3.bf16.msra.mxu0 %v2032_v29  ;;  %v1316_v38 = vld [vmem:[%s3076_s7 + $0x18] sm:$0xff] }
 0x221   : > { %v1011_v35 = vmul.f32 %v2248_v36, %v2819_v45  ;;  %1903 = vmatmul.mubr.f32.gmra.mrb[28].mxu0 %v1010_v62  ;;  %2072 = vmatpush3.bf16.msra.mxu1 %v2032_v29  ;;  %v2036_v39 = vpack.c.bf16 %v1316_v38, %v1315_v50  ;;  %v1319_v45 = vld [vmem:[%s3076_s7 + $0x30] sm:$0xff] }
 0x222   : > { %v2044_v51 = vpack.c.bf16 %v1320_v49, %v1319_v45 }
 0x223   : > { %1905 = vmatprep.mubr.f32.mxu0 %v1011_v35  ;;  %2037 = vmatprep.subr.bf16.mxu0 %v2036_v39 }
 0x224   : > { %2065 = vmatprep.subr.bf16.mxu1 %v2036_v39  ;;  %2039 = vmatpush3.bf16.msra.mxu0 %v2036_v39 }
 0x225   : > { %1906 = vmatmul.mubr.f32.gmra.mrb[30].mxu0 %v1012_v37  ;;  %2073 = vmatpush3.bf16.msra.mxu1 %v2036_v39 }
 0x226   : > { %2041 = vmatprep.subr.bf16.mxu0 %v2040_v43  ;;  %2066 = vmatprep.subr.bf16.mxu1 %v2040_v43 }
 0x228   : > { %2043 = vmatpush3.bf16.msra.mxu0 %v2040_v43 }
 0x229   : > { %2074 = vmatpush3.bf16.msra.mxu1 %v2040_v43  ;;  %2045 = vmatprep.subr.bf16.mxu0 %v2044_v51 }
 0x22a   : > { %2067 = vmatprep.subr.bf16.mxu1 %v2044_v51 }
 0x22c   : > { %2047 = vmatpush3.bf16.msra.mxu0 %v2044_v51 }
 0x22d   : > { %2075 = vmatpush3.bf16.msra.mxu1 %v2044_v51  ;;  %2049 = vmatprep.subr.bf16.mxu0 %v2048_v56 }
 0x22e   : > { %2068 = vmatprep.subr.bf16.mxu1 %v2048_v56 }
 0x230   : > { %2051 = vmatpush3.bf16.msra.mxu0 %v2048_v56 }
 0x231   : > { %2076 = vmatpush3.bf16.msra.mxu1 %v2048_v56  ;;  %2053 = vmatprep.subr.bf16.mxu0 %v2052_v27 }
 0x232   : > { %2069 = vmatprep.subr.bf16.mxu1 %v2052_v27 }
 0x234   : > { %2055 = vmatpush3.bf16.msra.mxu0 %v2052_v27 }
 0x235   : > { %2077 = vmatpush3.bf16.msra.mxu1 %v2052_v27  ;;  %2057 = vmatprep.subr.bf16.mxu0 %v2056_v18 }
 0x236   : > { %2070 = vmatprep.subr.bf16.mxu1 %v2056_v18 }
 0x238   : > { %2059 = vmatpush3.bf16.msra.mxu0 %v2056_v18 }
 0x239   : > { %2078 = vmatpush3.bf16.msra.mxu1 %v2056_v18  ;;  %2061 = vmatprep.subr.bf16.mxu0 %v2060_v63 }
 0x23a   : > { %2071 = vmatprep.subr.bf16.mxu1 %v2060_v63 }
 0x23c   : > { %2063 = vmatpush3.bf16.msra.mxu0 %v2060_v63 }
 0x23d   : > { %2079 = vmatpush3.bf16.msra.mxu1 %v2060_v63 }
 0x2d9   : > { %v1886_v24 = vpop.f32.mrb[16].mxu0 }
 0x2da   : > { %v2898_v0 = vadd.f32 %v1886_v24, %v2892_v53  ;;  %v1102_v2 = vpop.f32.mrb[17].mxu0 }
 0x2db   : > { %v2901_v3 = vadd.f32 %v2892_v53, %v1102_v2 }
 0x2dc   : > { %v1186_v34 = vmul.f32 %v2895_v42, %v2898_v0 }
 0x2dd   : > { %v1185_v44 = vmul.f32 %v2895_v42, %v2901_v3  ;;  %v1889_v5 = vpop.f32.mrb[18].mxu0 }
 0x2de   : > { %v1632_v6 = vmul.f32 -1.442695, %v1186_v34  ;;  %v2908_v32 = vadd.f32 %v1889_v5, %v2892_v53  ;;  %v1112_v46 = vpop.f32.mrb[19].mxu0 }
 0x2df   : > { %v1631_v7 = vmul.f32 -1.442695, %v1185_v44  ;;  %v2911_v8 = vadd.f32 %v2892_v53, %v1112_v46 }
 0x2e0   : > { %2249 = vpow2.f32 %v1632_v6  ;;  %v1188_v10 = vmul.f32 %v2895_v42, %v2908_v32 }
 0x2e1   : > { %2251 = vpow2.f32 %v1631_v7  ;;  %v1187_v13 = vmul.f32 %v2895_v42, %v2911_v8  ;;  %v1892_v14 = vpop.f32.mrb[20].mxu0 }
 0x2e2   : > { %v1634_v16 = vmul.f32 -1.442695, %v1188_v10  ;;  %v2918_v41 = vadd.f32 %v1892_v14, %v2892_v53  ;;  %v1122_v17 = vpop.f32.mrb[21].mxu0 }
 0x2e3   : > { %v1633_v4 = vmul.f32 -1.442695, %v1187_v13  ;;  %v2921_v47 = vadd.f32 %v2892_v53, %v1122_v17 }
 0x2e4   : > { %2253 = vpow2.f32 %v1634_v16  ;;  %v1190_v19 = vmul.f32 %v2895_v42, %v2918_v41 }
 0x2e5   : > { %2255 = vpow2.f32 %v1633_v4  ;;  %v1189_v20 = vmul.f32 %v2895_v42, %v2921_v47 }
 0x2e6   : > { %v1636_v21 = vmul.f32 -1.442695, %v1190_v19 }
 0x2e7   : > { %v1635_v22 = vmul.f32 -1.442695, %v1189_v20 }
 0x2e8   : > { %2257 = vpow2.f32 %v1636_v21  ;;  %v1895_v48 = vpop.f32.mrb[22].mxu0 }
 0x2e9   : > { %2259 = vpow2.f32 %v1635_v22  ;;  %v2928_v26 = vadd.f32 %v1895_v48, %v2892_v53  ;;  %v1132_v28 = vpop.f32.mrb[23].mxu0 }
 0x2ea   : > { %v2250_v9 = vpop.eup %2249  ;;  %v2931_v31 = vadd.f32 %v2892_v53, %v1132_v28 }
 0x2eb   : > { %v2252_v12 = vpop.eup %2251  ;;  %v1250_v60 = vadd.f32 1.0, %v2250_v9  ;;  %v1192_v57 = vmul.f32 %v2895_v42, %v2928_v26 }
 0x2ec   : > { %v1249_v33 = vadd.f32 1.0, %v2252_v12  ;;  %v1191_v62 = vmul.f32 %v2895_v42, %v2931_v31  ;;  %v1898_v36 = vpop.f32.mrb[24].mxu0 }
 0x2ed   : > { %2261 = vrcp.f32 %v1250_v60  ;;  %v1638_v35 = vmul.f32 -1.442695, %v1192_v57  ;;  %v2938_v37 = vadd.f32 %v1898_v36, %v2892_v53  ;;  %v1142_v11 = vpop.f32.mrb[25].mxu0 }
 0x2ee   : > { %v2254_v15 = vpop.eup %2253  ;;  %2263 = vrcp.f32 %v1249_v33  ;;  %v1637_v29 = vmul.f32 -1.442695, %v1191_v62  ;;  %v2941_v50 = vadd.f32 %v2892_v53, %v1142_v11 }
 0x2ef   : > { %v2256_v38 = vpop.eup %2255  ;;  %v1252_v39 = vadd.f32 1.0, %v2254_v15  ;;  %2265 = vpow2.f32 %v1638_v35  ;;  %v1194_v40 = vmul.f32 %v2895_v42, %v2938_v37 }
 0x2f0   : > { %v1251_v1 = vadd.f32 1.0, %v2256_v38  ;;  %2267 = vpow2.f32 %v1637_v29  ;;  %v1193_v43 = vmul.f32 %v2895_v42, %v2941_v50  ;;  %v1901_v45 = vpop.f32.mrb[26].mxu0 }
 0x2f1   : > { %2269 = vrcp.f32 %v1252_v39  ;;  %v1640_v49 = vmul.f32 -1.442695, %v1194_v40  ;;  %v2948_v51 = vadd.f32 %v1901_v45, %v2892_v53  ;;  %v1152_v54 = vpop.f32.mrb[27].mxu0 }
 0x2f2   : > { %v2258_v55 = vpop.eup %2257  ;;  %2271 = vrcp.f32 %v1251_v1  ;;  %v1639_v56 = vmul.f32 -1.442695, %v1193_v43  ;;  %v2951_v58 = vadd.f32 %v2892_v53, %v1152_v54 }
 0x2f3   : > { %v2260_v23 = vpop.eup %2259  ;;  %v1254_v27 = vadd.f32 1.0, %v2258_v55  ;;  %2273 = vpow2.f32 %v1640_v49  ;;  %v1196_v59 = vmul.f32 %v2895_v42, %v2948_v51 }
 0x2f4   : > { %v1253_v52 = vadd.f32 1.0, %v2260_v23  ;;  %2275 = vpow2.f32 %v1639_v56  ;;  %v1195_v18 = vmul.f32 %v2895_v42, %v2951_v58  ;;  %v1904_v25 = vpop.f32.mrb[28].mxu0 }
 0x2f5   : > { %2277 = vrcp.f32 %v1254_v27  ;;  %v1642_v61 = vmul.f32 -1.442695, %v1196_v59  ;;  %v2958_v63 = vadd.f32 %v1904_v25, %v2892_v53  ;;  %v1162_v30 = vpop.f32.mrb[29].mxu0 }
 0x2f6   : > { %2279 = vrcp.f32 %v1253_v52  ;;  %v1641_v24 = vmul.f32 -1.442695, %v1195_v18  ;;  %v2961_v2 = vadd.f32 %v2892_v53, %v1162_v30 }
 0x2f7   : > { %v2262_v34 = vpop.eup %2261  ;;  %2281 = vpow2.f32 %v1642_v61  ;;  %v1198_v44 = vmul.f32 %v2895_v42, %v2958_v63 }
 0x2f8   : > { %v2264_v5 = vpop.eup %2263  ;;  %2283 = vpow2.f32 %v1641_v24  ;;  %v1197_v6 = vmul.f32 %v2895_v42, %v2961_v2  ;;  %v1907_v46 = vpop.f32.mrb[30].mxu0  ;;  %v1298_v4 = vmul.f32 %v2262_v34, %v2898_v0 }
 0x2f9   : > { %v2266_v7 = vpop.eup %2265  ;;  %v1297_v10 = vmul.f32 %v2264_v5, %v2901_v3  ;;  %v1644_v13 = vmul.f32 -1.442695, %v1198_v44  ;;  %v2969_v14 = vadd.f32 %v1907_v46, %v2892_v53  ;;  %v1172_v16 = vpop.f32.mrb[31].mxu0 }
 0x2fa   : > { %v2268_v17 = vpop.eup %2267  ;;  %v1256_v19 = vadd.f32 1.0, %v2266_v7  ;;  %v1643_v20 = vmul.f32 -1.442695, %v1197_v6  ;;  %v2973_v21 = vadd.f32 %v2892_v53, %v1172_v16 }
 0x2fb   : > { %v2270_v22 = vpop.eup %2269  ;;  %v1255_v48 = vadd.f32 1.0, %v2268_v17  ;;  %2285 = vpow2.f32 %v1644_v13  ;;  %v1200_v28 = vmul.f32 %v2895_v42, %v2969_v14  ;;  %1940 = vmatprep.mubr.f32.mxu0 %v1297_v10 }
 0x2fc   : > { %v2272_v3 = vpop.eup %2271  ;;  %2287 = vrcp.f32 %v1256_v19  ;;  %v1199_v9 = vmul.f32 %v2895_v42, %v2973_v21  ;;  %1941 = vmatmul.mubr.f32.vlgmr.msra.gmra.mrb[32].mxu0 %v1298_v4  ;;  %v1300_v57 = vmul.f32 %v2270_v22, %v2908_v32 }
 0x2fd   : > { %v2274_v12 = vpop.eup %2273  ;;  %v1299_v0 = vmul.f32 %v2272_v3, %v2911_v8  ;;  %2289 = vrcp.f32 %v1255_v48  ;;  %v1646_v60 = vmul.f32 -1.442695, %v1200_v28 }
 0x2fe   : > { %v2276_v53 = vpop.eup %2275  ;;  %v1258_v33 = vadd.f32 1.0, %v2274_v12  ;;  %2291 = vpow2.f32 %v1643_v20  ;;  %v1645_v62 = vmul.f32 -1.442695, %v1199_v9 }
 0x2ff   : > { %v2278_v36 = vpop.eup %2277  ;;  %v1257_v35 = vadd.f32 1.0, %v2276_v53  ;;  %2293 = vpow2.f32 %v1646_v60  ;;  %1943 = vmatprep.mubr.f32.mxu0 %v1299_v0 }
 0x300   : > { %v2280_v11 = vpop.eup %2279  ;;  %2295 = vrcp.f32 %v1258_v33  ;;  %1944 = vmatmul.mubr.f32.gmra.mrb[34].mxu0 %v1300_v57  ;;  %v1302_v29 = vmul.f32 %v2278_v36, %v2918_v41 }
 0x301   : > { %v2282_v42 = vpop.eup %2281  ;;  %v1301_v15 = vmul.f32 %v2280_v11, %v2921_v47  ;;  %2297 = vrcp.f32 %v1257_v35 }
 0x302   : > { %v2284_v8 = vpop.eup %2283  ;;  %v1260_v38 = vadd.f32 1.0, %v2282_v42  ;;  %2299 = vpow2.f32 %v1645_v62 }
 0x303   : > { %v1259_v32 = vadd.f32 1.0, %v2284_v8  ;;  %1946 = vmatprep.mubr.f32.mxu0 %v1301_v15 }
 0x304   : > { %2301 = vrcp.f32 %v1260_v38  ;;  %1947 = vmatmul.mubr.f32.gmra.mrb[36].mxu0 %v1302_v29 }
 0x305   : > { %v2286_v39 = vpop.eup %2285  ;;  %2303 = vrcp.f32 %v1259_v32 }
 0x306   : > { %v2288_v40 = vpop.eup %2287  ;;  %v1262_v1 = vadd.f32 1.0, %v2286_v39 }
 0x307   : > { %v2290_v43 = vpop.eup %2289  ;;  %v1304_v47 = vmul.f32 %v2288_v40, %v2928_v26 }
 0x308   : > { %v2292_v45 = vpop.eup %2291  ;;  %v1303_v49 = vmul.f32 %v2290_v43, %v2931_v31  ;;  %2305 = vrcp.f32 %v1262_v1 }
 0x309   : > { %v2294_v54 = vpop.eup %2293  ;;  %v1261_v55 = vadd.f32 1.0, %v2292_v45 }
 0x30a   : > { %v2296_v56 = vpop.eup %2295  ;;  %v1264_v41 = vadd.f32 1.0, %v2294_v54  ;;  %1949 = vmatprep.mubr.f32.mxu1 %v1303_v49 }
 0x30b   : > { %v2298_v23 = vpop.eup %2297  ;;  %2307 = vrcp.f32 %v1261_v55  ;;  %1950 = vmatmul.mubr.f32.vlgmr.msra.gmra.mrb[16].mxu1 %v1304_v47  ;;  %v1306_v52 = vmul.f32 %v2296_v56, %v2938_v37 }
 0x30c   : > { %v2300_v27 = vpop.eup %2299  ;;  %v1305_v59 = vmul.f32 %v2298_v23, %v2941_v50  ;;  %2309 = vrcp.f32 %v1264_v41 }
 0x30d   : > { %v1263_v18 = vadd.f32 1.0, %v2300_v27 }
 0x30e   : > { %v2302_v25 = vpop.eup %2301  ;;  %1952 = vmatprep.mubr.f32.mxu1 %v1305_v59 }
 0x30f   : > { %v2304_v31 = vpop.eup %2303  ;;  %2311 = vrcp.f32 %v1263_v18  ;;  %1953 = vmatmul.mubr.f32.gmra.mrb[18].mxu1 %v1306_v52  ;;  %v1308_v61 = vmul.f32 %v2302_v25, %v2948_v51  ;;  %v1647_v51 = vld [vmem:[%s3077_s8] ss:$0 sm:$0xff] }
 0x310   : > { %v1307_v26 = vmul.f32 %v2304_v31, %v2951_v58 }
 0x312   : > { %1955 = vmatprep.mubr.f32.mxu1 %v1307_v26  ;;  %v2306_v30 = vpop.eup %2305 }
 0x313   : > { %1956 = vmatmul.mubr.f32.gmra.mrb[20].mxu1 %v1308_v61  ;;  %v1310_v37 = vmul.f32 %v2306_v30, %v2958_v63 }
 0x315   : > { %v2308_v24 = vpop.eup %2307 }
 0x316   : > { %v1309_v50 = vmul.f32 %v2308_v24, %v2961_v2  ;;  %v2310_v34 = vpop.eup %2309 }
 0x317   : > { %v1312_v58 = vmul.f32 %v2310_v34, %v2969_v14 }
 0x318   : > { %1958 = vmatprep.mubr.f32.mxu1 %v1309_v50 }
 0x319   : > { %v2312_v44 = vpop.eup %2311  ;;  %1959 = vmatmul.mubr.f32.gmra.mrb[22].mxu1 %v1310_v37 }
 0x31a   : > { %v1311_v5 = vmul.f32 %v2312_v44, %v2973_v21 }
 0x31c   : > { %1961 = vmatprep.mubr.f32.mxu1 %v1311_v5 }
 0x31d   : > { %1962 = vmatmul.mubr.f32.gmra.mrb[24].mxu1 %v1312_v58 }
 0x3cf   : > { %v1942_v2 = vpop.f32.mrb[32].mxu0 }
 0x3d0   : > { %v1408_v6 = vadd.f32 %v1942_v2, %v1647_v51  ;;  %v1402_v63 = vpop.f32.mrb[33].mxu0 }
 0x3d1   : > { %v1403_v46 = vadd.f32 %v1647_v51, %v1402_v63 }
 0x3d2   : > { %1482 = vst [vmem:[%s2999_s12 + $0x8] sm:$0xff] %v1408_v6 }
 0x3d3   : > { %1481 = vst [vmem:[%s2999_s12] sm:$0xff] %v1403_v46  ;;  %v1945_v7 = vpop.f32.mrb[34].mxu0 }
 0x3d4   : > { %v1418_v10 = vadd.f32 %v1945_v7, %v1647_v51  ;;  %v1412_v13 = vpop.f32.mrb[35].mxu0 }
 0x3d5   : > { %v1413_v14 = vadd.f32 %v1647_v51, %v1412_v13 }
 0x3d6   : > { %1484 = vst [vmem:[%s2999_s12 + $0x18] sm:$0xff] %v1418_v10 }
 0x3d7   : > { %1483 = vst [vmem:[%s2999_s12 + $0x10] sm:$0xff] %v1413_v14  ;;  %v1948_v16 = vpop.f32.mrb[36].mxu0 }
 0x3d8   : > { %v1428_v17 = vadd.f32 %v1948_v16, %v1647_v51  ;;  %v1422_v4 = vpop.f32.mrb[37].mxu0 }
 0x3d9   : > { %v1423_v19 = vadd.f32 %v1647_v51, %v1422_v4 }
 0x3da   : > { %1486 = vst [vmem:[%s2999_s12 + $0x28] sm:$0xff] %v1428_v17 }
 0x3db   : > { %1485 = vst [vmem:[%s2999_s12 + $0x20] sm:$0xff] %v1423_v19 }
 0x3de   : > { %v1951_v20 = vpop.f32.mrb[16].mxu1 }
 0x3df   : > { %v1438_v21 = vadd.f32 %v1951_v20, %v1647_v51  ;;  %v1432_v22 = vpop.f32.mrb[17].mxu1 }
 0x3e0   : > { %v1433_v48 = vadd.f32 %v1647_v51, %v1432_v22 }
 0x3e1   : > { %1488 = vst [vmem:[%s2999_s12 + $0x38] sm:$0xff] %v1438_v21 }
 0x3e2   : > { %1487 = vst [vmem:[%s2999_s12 + $0x30] sm:$0xff] %v1433_v48  ;;  %v1954_v28 = vpop.f32.mrb[18].mxu1 }
 0x3e3   : > { %v1448_v3 = vadd.f32 %v1954_v28, %v1647_v51  ;;  %v1442_v9 = vpop.f32.mrb[19].mxu1 }
 0x3e4   : > { %v1443_v12 = vadd.f32 %v1647_v51, %v1442_v9 }
 0x3e5   : > { %1490 = vst [vmem:[%s2999_s12 + $0x48] sm:$0xff] %v1448_v3 }
 0x3e6   : > { %1489 = vst [vmem:[%s2999_s12 + $0x40] sm:$0xff] %v1443_v12  ;;  %v1957_v0 = vpop.f32.mrb[20].mxu1 }
 0x3e7   : > { %v1458_v60 = vadd.f32 %v1957_v0, %v1647_v51  ;;  %v1452_v53 = vpop.f32.mrb[21].mxu1 }
 0x3e8   : > { %v1453_v57 = vadd.f32 %v1647_v51, %v1452_v53 }
 0x3e9   : > { %1492 = vst [vmem:[%s2999_s12 + $0x58] sm:$0xff] %v1458_v60 }
 0x3ea   : > { %1491 = vst [vmem:[%s2999_s12 + $0x50] sm:$0xff] %v1453_v57 }
 0x3ec   : > { %v1960_v33 = vpop.f32.mrb[22].mxu1 }
 0x3ed   : > { %v1468_v62 = vadd.f32 %v1960_v33, %v1647_v51  ;;  %v1462_v36 = vpop.f32.mrb[23].mxu1 }
 0x3ee   : > { %v1463_v35 = vadd.f32 %v1647_v51, %v1462_v36 }
 0x3ef   : > { %1494 = vst [vmem:[%s2999_s12 + $0x68] sm:$0xff] %v1468_v62 }
 0x3f0   : > { %1493 = vst [vmem:[%s2999_s12 + $0x60] sm:$0xff] %v1463_v35  ;;  %v1963_v11 = vpop.f32.mrb[24].mxu1 }
 0x3f1   : > { %v1478_v42 = vadd.f32 %v1963_v11, %v1647_v51  ;;  %v1472_v15 = vpop.f32.mrb[25].mxu1 }
 0x3f2   : > { %v1473_v8 = vadd.f32 %v1647_v51, %v1472_v15 }
 0x3f3   : > { %1496 = vst [vmem:[%s2999_s12 + $0x78] sm:$0xff] %v1478_v42 }
 0x3f4   : > { %1495 = vst [vmem:[%s2999_s12 + $0x70] sm:$0xff] %v1473_v8 }
 0x3f5   : > { %2326 = shalt.err (!%p2323_p3)
}
 0x3f6   : > { %s2327_s28 = scalar_lea.hbm %s3020_s26, 2048  ;;  %s2331_s21 = scalar_lea.hbm %s3079_s10, 8192 }
 0x3f7   : > { %p2328_p4 = scmp.ne.s32.totalorder %s3020_s26, %s2327_s28  ;;  %p2332_p9 = scmp.lt.u32.totalorder %s3020_s26, %s3079_s10 }
 0x3f8   : > { %p2333_p10 = scmp.lt.u32.totalorder %s2331_s21, %s2327_s28  ;;  %p2335_p12 = scmp.lt.u32.totalorder %s2327_s28, %s3020_s26 }
 0x3f9   : > { %p2329_p7 = pnand %p2328_p4, %p2473_p5 }
 0x3fa   : > { %p2334_p11 = por %p2333_p10, %p2332_p9 }
 0x3fb   : > { %p2330_p8 = pneg %p2329_p7 }
 0x3fc   : > { %p2336_p13 = por %p2335_p12, %p2334_p11 }
 0x3fe   : > { %p2337_p0 = pnand %p2336_p13, %p2330_p8 }
 0x400   : > { %2340 = shalt.err (!%p2337_p0)
}
 0x401   : > { %s2378_s27 = smov 128   ;;  %s2379_s30 = smov 8  }
 0x402   : > { %2080 = dma.vmem_to_hbm [thread:$0]  (%p2473_p5), %s3022_s20, 2048, %s3020_s26, %s3028_s17, %s2378_s27, %s2378_s27, %s2379_s30  }
 0x403 PF: > { %p2086_p1 = scmp.ge.s32.totalorder %s2375_s16, 2  ;;  %s1526_s11 = sand.u32 1, %s2363_s13  }
 0x404   : > { %s1527_s28 = scalar_lea.sflag [#allocation3], %s1526_s11 }
 0x405   : > { %p2083_p2 = pnand %p2086_p1, %p2477_p6 }
 0x407   : > { %2358 = dma.done.wait (!%p2083_p2), %s1527_s28, 2048  }
 0x408   : > { %2360 = vsyncadd (!%p2083_p2), %s1527_s28, 4294965248  ;;  %p20_p3 = scmp.ge.s32.totalorder %s2460_s19, 6   ;;  %s3082_s13 = smov %s2367_s14 }
 0x409   : > { %s3083_s14 = smov %s2371_s15  ;;  %s3084_s15 = smov %s2471_s22 }
 0x40a   : > { %s3085_s16 = smov %s2460_s19  ;;  %22 = sbr.rel (!%p20_p3) target bundleno = 3 (0x3), region = 95 }
 0x411   :  { %1532 = vsyncpa [#allocation3], 1 }
 0x412   :  { %1534 = vsyncpa [#allocation3 + $0x1], 1 }

</bundles_post_ra>
